<compile_context>
chip_gen: v5e
topology: v5e:2x2
jax: 0.10.0
libtpu: 0.0.40
codegen_flags: <defaults>
</compile_context>

<pallas_src>
import functools

import numpy as np
import jax
import jax.numpy as jnp
from jax.experimental import pallas as pl
from jax.experimental.pallas import tpu as pltpu

LANE = 128  # TPU lane width


# ---------------------------------------------------------------------------
# Glue: group-tiled, level-major, lane-padded column layout (built once).
# ---------------------------------------------------------------------------
def _bit_reverse(v, nbits):
    r = 0
    for l in range(nbits):
        r |= ((v >> l) & 1) << (nbits - 1 - l)
    return r


@functools.lru_cache(maxsize=None)
def _build_layout(tree_depth, num_trees, trees_per_tile):
    """Returns (perm, valid, scale, num_groups) for the permuted column layout.

    Permuted columns are group-major.  Within a group of G (=trees_per_tile)
    trees, level i occupies columns [G*(2^i-1), G*(2^i-1)+G*2^i); within a
    level, column offset c = t_local + G*v, where v encodes the already-taken
    path bits with the FIRST decision as the LSB.  `valid[c]` is False for
    columns of padded (non-existent) trees; `scale[c]` is the PyTorch
    per-level sigmoid scale, folded into gamma/beta at glue time.
    """
    F = 2 ** tree_depth - 1
    G = trees_per_tile
    num_groups = -(-num_trees // G)  # ceil
    n_cols = num_groups * G * F
    perm = np.zeros(n_cols, dtype=np.int32)
    valid = np.zeros(n_cols, dtype=bool)
    scale = np.zeros(n_cols, dtype=np.float32)
    col = 0
    for g in range(num_groups):
        for i in range(tree_depth):
            s = 1.0 / 2 ** (tree_depth - i - 1)
            j = 2 ** i - 1  # start fork of level i in the original [T, F] layout
            for c in range(G * 2 ** i):
                t = g * G + (c % G)
                v = c // G
                if t < num_trees:
                    perm[col] = t * F + j + _bit_reverse(v, i)
                    valid[col] = True
                scale[col] = s
                col += 1
    assert col == n_cols
    return perm, valid, scale, num_groups


def prepare_nst_params(weight, gamma, beta, *, tree_depth, num_trees,
                       trees_per_tile=LANE, d_pad_multiple=None):
    """One-time parameter packing (hoisted out of the per-forward path).

    weight: [D, num_trees * num_forks]  (transposed from PyTorch's [out, in]).

    The linear bias is intentionally NOT taken: TRAINING-mode BatchNorm
    subtracts the batch mean, so a per-column bias is an exact no-op.  These
    packed params are only valid for train-mode (batch-statistics) BN.
    """
    D, TF = weight.shape
    F = 2 ** tree_depth - 1
    assert TF == num_trees * F
    if d_pad_multiple is None:
        # 256-align K only when the linear layer is big enough to be MXU-bound
        # (v6e/v7x 2x256^2 MXU); for small D, extra padding is just DMA waste.
        d_pad_multiple = 256 if D >= 512 else LANE

    perm, valid, scale, _ = _build_layout(tree_depth, num_trees, trees_per_tile)
    perm = jnp.asarray(perm)
    valid = jnp.asarray(valid)
    scale = jnp.asarray(scale)

    # Permute + zero padded-tree columns; zero-pad the input dim to an MXU-
    # friendly multiple; bf16 operands for the MXU.
    w_p = jnp.where(valid[None, :], weight[:, perm], 0.0)
    D_pad = ((D + d_pad_multiple - 1) // d_pad_multiple) * d_pad_multiple
    w_p = jnp.pad(w_p, ((0, D_pad - D), (0, 0))).astype(jnp.bfloat16)

    # Fold the per-level sigmoid scale into the BN affine (exact).
    g_p = jnp.where(valid, gamma[perm] * scale, 0.0).reshape(1, -1).astype(jnp.float32)
    b_p = jnp.where(valid, beta[perm] * scale, 0.0).reshape(1, -1).astype(jnp.float32)
    return w_p, g_p, b_p


# ---------------------------------------------------------------------------
# Pallas kernel
# ---------------------------------------------------------------------------
def make_nst_kernel(batch, tree_depth, trees_per_tile, t_real, bn_eps, use_scratch):
    G = trees_per_tile
    n_leaf_half = 2 ** (tree_depth - 1)
    inv_b = 1.0 / batch

    def sigm(z):
        # sigmoid(z) == 0.5 * tanh(0.5*z) + 0.5  -> single EUP push.
        return 0.5 * jnp.tanh(0.5 * z) + 0.5

    def kernel(x_ref, w_ref, gamma_ref, beta_ref, out_ref, *scratch):
        grp = pl.program_id(0)

        # Linear (bf16 operands, f32 accumulation).  Bias dropped: it cancels
        # against the batch-mean subtraction of training-mode BatchNorm.
        x = x_ref[...]                                   # [B, D_pad]   bf16
        w = w_ref[...]                                   # [D_pad, G*F] bf16
        logits = jnp.dot(x, w, preferred_element_type=jnp.float32)  # [B, G*F]

        # BatchNorm1d (training mode), single pass: E[x], E[x^2].
        mean = jnp.sum(logits, axis=0, keepdims=True) * inv_b
        mean_sq = jnp.sum(logits * logits, axis=0, keepdims=True) * inv_b
        var = jnp.maximum(mean_sq - mean * mean, 0.0)    # clamp f32 cancellation
        norms = (logits - mean) * jax.lax.rsqrt(var + bn_eps)
        norms = norms * gamma_ref[...] + beta_ref[...]   # scale pre-folded

        # Root path probability: 1 for real trees, 0 for lane-padded trees.
        t_idx = jax.lax.broadcasted_iota(jnp.int32, (batch, G), 1)
        root = jnp.where(grp * G + t_idx < t_real, 1.0, 0.0).astype(jnp.float32)

        off_last = G * (2 ** (tree_depth - 1) - 1)

        if not use_scratch:
            # Path probabilities live entirely in vregs (no VMEM round-trip).
            nodes = [root]
            for i in range(tree_depth - 1):
                off = G * (2 ** i - 1)
                new_nodes = [None] * (2 * len(nodes))
                for v in range(2 ** i):
                    d1 = sigm(norms[:, off + v * G: off + (v + 1) * G])
                    r = nodes[v] * d1
                    new_nodes[v] = nodes[v] - r          # left = cur - right
                    new_nodes[2 ** i + v] = r
                nodes = new_nodes
            # Last level: lane-dense per-tree partial (pure VPU adds).
            part = None
            for v in range(n_leaf_half):
                d1 = sigm(norms[:, off_last + v * G: off_last + (v + 1) * G])
                r = nodes[v] * d1
                part = r if part is None else part + r
            out_ref[...] = part                          # [B, G] unmasked store
        else:
            # Fallback for large batch/depth: level-major VMEM scratch buffer,
            # static 128-aligned lane slices only.
            tree_ref = scratch[0]
            tree_ref[:, 0:G] = root
            for i in range(tree_depth - 1):
                off = G * (2 ** i - 1)
                width = G * 2 ** i
                cur = tree_ref[:, 0:width]
                d1 = sigm(norms[:, off:off + width])
                right = cur * d1
                tree_ref[:, 0:width] = cur - right       # left children
                tree_ref[:, width:2 * width] = right     # right children
            width = G * n_leaf_half
            cur = tree_ref[:, 0:width]
            d1 = sigm(norms[:, off_last:off_last + width])
            right = cur * d1
            part = None
            for v in range(n_leaf_half):
                sl = right[:, v * G:(v + 1) * G]
                part = sl if part is None else part + sl
            out_ref[...] = part

    return kernel


def nst_forward(x, w_p, g_p, b_p, *, tree_depth, num_trees,
                trees_per_tile=LANE, bn_eps=1e-5, epsilon=1e-5):
    B, D = x.shape
    D_pad = w_p.shape[0]
    G = trees_per_tile
    F = 2 ** tree_depth - 1
    num_groups = w_p.shape[1] // (G * F)

    x_pad = jnp.pad(x, ((0, 0), (0, D_pad - D))).astype(jnp.bfloat16)

    # Keep path probabilities in vregs when the leaf-level working set is small;
    # otherwise fall back to a VMEM scratch buffer.
    leaf_bytes = B * G * (2 ** (tree_depth - 1)) * 4
    use_scratch = leaf_bytes > (96 * 1024)
    kernel = make_nst_kernel(B, tree_depth, G, num_trees, bn_eps, use_scratch)

    scratch_shapes = []
    if use_scratch:
        scratch_shapes.append(pltpu.VMEM((B, G * 2 ** (tree_depth - 1)), jnp.float32))

    # Explicit VMEM budget (v7x: 64 MiB physical, 32 MiB scoped default).
    est_bytes = (2 * B * D_pad * 2            # x (bf16, double-buffered)
                 + 2 * D_pad * G * F * 2      # W tile (bf16, double-buffered)
                 + 2 * 2 * G * F * 4          # gamma + beta tiles (f32)
                 + 2 * B * G * 4              # output tile (f32)
                 + 3 * B * G * F * 4          # logits / norms f32 temporaries
                 + leaf_bytes)
    vmem_limit = int(min(64 << 20, max(32 << 20, 2 * est_bytes)))

    n_total = num_groups * G * F
    cost = pl.CostEstimate(
        flops=2 * B * D_pad * n_total + 12 * B * n_total,
        transcendentals=B * n_total,
        bytes_accessed=(B * D_pad * 2 + D_pad * n_total * 2
                        + 2 * n_total * 4 + B * num_groups * G * 4),
    )

    part = pl.pallas_call(
        kernel,
        out_shape=jax.ShapeDtypeStruct((B, num_groups * G), jnp.float32),
        grid=(num_groups,),
        in_specs=[
            pl.BlockSpec((B, D_pad), lambda g: (0, 0)),        # x (grid-invariant)
            pl.BlockSpec((D_pad, G * F), lambda g: (0, g)),    # W tile per group
            pl.BlockSpec((1, G * F), lambda g: (0, g)),        # gamma' tile
            pl.BlockSpec((1, G * F), lambda g: (0, g)),        # beta'  tile
        ],
        # Each group writes its own lane-dense [B, 128] per-tree partial block:
        # no carried accumulator -> group axis is truly parallel (megacore).
        out_specs=pl.BlockSpec((B, G), lambda g: (0, g)),
        scratch_shapes=scratch_shapes,
        compiler_params=pltpu.CompilerParams(
            dimension_semantics=("parallel",),
            vmem_limit_bytes=vmem_limit),
        cost_estimate=cost,
    )(x_pad, w_p, g_p, b_p)

    # Tiny final reduction (mean over real trees) + cap, in plain XLA.
    prob1 = jnp.sum(part, axis=1, keepdims=True) * (1.0 / num_trees)
    return (1.0 - 2.0 * epsilon) * prob1 + epsilon


# ---------------------------------------------------------------------------
# Pure-JAX reference: direct port of the PyTorch forward (unpermuted, with bias).
# ---------------------------------------------------------------------------
def nst_reference(x, weight, bias, gamma, beta, tree_depth, num_trees,
                  bn_eps=1e-5, epsilon=1e-5):
    logits = x @ weight + bias
    mean = jnp.mean(logits, axis=0, keepdims=True)
    var = jnp.mean((logits - mean) ** 2, axis=0, keepdims=True)
    norms = (logits - mean) / jnp.sqrt(var + bn_eps) * gamma + beta
    F = 2 ** tree_depth - 1
    reshapes = norms.reshape(-1, num_trees, F)
    trees_flat = jnp.ones_like(reshapes[:, :, 0:1])
    j = 0
    trees = None
    for i in range(tree_depth):
        scale = 1.0 / 2 ** (tree_depth - i - 1)
        d1 = jax.nn.sigmoid(scale * reshapes[:, :, j:j + 2 ** i])
        decisions = jnp.stack([1.0 - d1, d1], axis=3)
        trees = trees_flat[:, :, :, None] * decisions
        trees_flat = trees.reshape(-1, num_trees, 2 ** (i + 1))
        j += 2 ** i
    probabilities = jnp.sum(trees, axis=2)
    probability1 = jnp.mean(probabilities[:, :, 1:2], axis=1)
    return (1.0 - 2.0 * epsilon) * probability1 + epsilon


def _make_case(key, num_inputs, tree_depth, num_trees, batch):
    F = 2 ** tree_depth - 1
    TF = num_trees * F
    kx, kw, kb, kg, kbe = jax.random.split(key, 5)
    x = jax.random.normal(kx, (batch, num_inputs), jnp.float32)
    bound = 1.0 / np.sqrt(num_inputs)
    weight = jax.random.uniform(kw, (num_inputs, TF), jnp.float32, -bound, bound)
    bias = jax.random.uniform(kb, (TF,), jnp.float32, -bound, bound)
    gamma = 1.0 + 0.1 * jax.random.normal(kg, (TF,), jnp.float32)
    beta = 0.1 * jax.random.normal(kbe, (TF,), jnp.float32)
    return x, weight, bias, gamma, beta


def _run_case(key, num_inputs, tree_depth, num_trees, batch):
    x, weight, bias, gamma, beta = _make_case(key, num_inputs, tree_depth,
                                              num_trees, batch)
    # One-time glue (permutation / padding / scale folding / bf16 cast).
    # The linear bias is omitted by construction (exact no-op under training BN).
    w_p, g_p, b_p = prepare_nst_params(weight, gamma, beta,
                                       tree_depth=tree_depth, num_trees=num_trees)
    fwd = jax.jit(functools.partial(nst_forward,
                                    tree_depth=tree_depth, num_trees=num_trees))
    out = jax.block_until_ready(fwd(x, w_p, g_p, b_p))
    ref = nst_reference(x, weight, bias, gamma, beta, tree_depth, num_trees)
    assert out.shape == (batch, 1)
    # Tolerance loosened vs. a pure-f32 pipeline because the MXU operands are
    # bf16 (accumulation and all vector math remain f32).
    np.testing.assert_allclose(np.asarray(out), np.asarray(ref),
                               atol=2e-2, rtol=2e-2)


# ---------------------------------------------------------------------------
if __name__ == "__main__":
    k0, k1 = jax.random.split(jax.random.PRNGKey(0))
    # Small demo case (single tree group, in-vreg path).
    _run_case(k0, num_inputs=32, tree_depth=3, num_trees=4, batch=8)
    # Multi-group / deeper case (2 grid groups, parallel axis, scratch path,
    # bit-reversed layout beyond depth 3).
    _run_case(k1, num_inputs=64, tree_depth=5, num_trees=200, batch=32)
    print("KERNEL_OK")
</pallas_src>

<mosaic_0001>
module attributes {stable_mosaic.version = 11 : i64} {
  func.func @kernel(%arg0: i32, %arg1: memref<8x128xbf16, #tpu.memory_space<vmem>>, %arg2: memref<128x896xbf16, #tpu.memory_space<vmem>>, %arg3: memref<1x896xf32, #tpu.memory_space<vmem>>, %arg4: memref<1x896xf32, #tpu.memory_space<vmem>>, %arg5: memref<8x128xf32, #tpu.memory_space<vmem>>) attributes {dimension_semantics = [#tpu.dimension_semantics<parallel>], iteration_bounds = array<i64: 1>, scalar_prefetch = 0 : i64, scratch_operands = 0 : i64, tpu.core_type = #tpu.core_type<tc>, window_params = [{pipeline_mode = #tpu.pipeline_mode<synchronous>, transform_indices = @transform_0, window_bounds = array<i64: 8, 128>}, {transform_indices = @transform_1, window_bounds = array<i64: 128, 896>}, {transform_indices = @transform_2, window_bounds = array<i64: 1, 896>}, {transform_indices = @transform_3, window_bounds = array<i64: 1, 896>}, {transform_indices = @transform_4, window_bounds = array<i64: 8, 128>}]} {
    %c0 = arith.constant 0 : index
    %c0_0 = arith.constant 0 : index
    %0 = vector.load %arg1[%c0, %c0_0] : memref<8x128xbf16, #tpu.memory_space<vmem>>, vector<8x128xbf16>
    %c0_1 = arith.constant 0 : index
    %c0_2 = arith.constant 0 : index
    %1 = vector.load %arg2[%c0_1, %c0_2] : memref<128x896xbf16, #tpu.memory_space<vmem>>, vector<128x896xbf16>
    %cst = arith.constant dense<0.000000e+00> : vector<8x896xf32>
    %2 = tpu.matmul %0, %1, %cst {dimension_numbers = #tpu.dot_dimension_numbers<[1], [0], [0], [1], [0, 0, 1, 1], [], []>} : vector<8x128xbf16>, vector<128x896xbf16>, vector<8x896xf32> -> vector<8x896xf32>
    %cst_3 = arith.constant dense<0.000000e+00> : vector<896xf32>
    %3 = vector.multi_reduction <add>, %2, %cst_3 [0] : vector<8x896xf32> to vector<896xf32>
    %4 = vector.shape_cast %3 : vector<896xf32> to vector<1x896xf32>
    %cst_4 = arith.constant 1.250000e-01 : f32
    %5 = vector.broadcast %cst_4 : f32 to vector<1x896xf32>
    %6 = arith.mulf %4, %5 : vector<1x896xf32>
    %7 = arith.mulf %2, %2 : vector<8x896xf32>
    %cst_5 = arith.constant dense<0.000000e+00> : vector<896xf32>
    %8 = vector.multi_reduction <add>, %7, %cst_5 [0] : vector<8x896xf32> to vector<896xf32>
    %9 = vector.shape_cast %8 : vector<896xf32> to vector<1x896xf32>
    %cst_6 = arith.constant 1.250000e-01 : f32
    %10 = vector.broadcast %cst_6 : f32 to vector<1x896xf32>
    %11 = arith.mulf %9, %10 : vector<1x896xf32>
    %12 = arith.mulf %6, %6 : vector<1x896xf32>
    %13 = arith.subf %11, %12 : vector<1x896xf32>
    %cst_7 = arith.constant 0.000000e+00 : f32
    %14 = vector.broadcast %cst_7 : f32 to vector<1x896xf32>
    %15 = arith.maximumf %13, %14 : vector<1x896xf32>
    %16 = vector.broadcast %6 : vector<1x896xf32> to vector<8x896xf32>
    %17 = arith.subf %2, %16 : vector<8x896xf32>
    %cst_8 = arith.constant 9.99999974E-6 : f32
    %18 = vector.broadcast %cst_8 : f32 to vector<1x896xf32>
    %19 = arith.addf %15, %18 : vector<1x896xf32>
    %20 = math.rsqrt %19 : vector<1x896xf32>
    %21 = vector.broadcast %20 : vector<1x896xf32> to vector<8x896xf32>
    %22 = arith.mulf %17, %21 : vector<8x896xf32>
    %c0_9 = arith.constant 0 : index
    %c0_10 = arith.constant 0 : index
    %23 = vector.load %arg3[%c0_9, %c0_10] : memref<1x896xf32, #tpu.memory_space<vmem>>, vector<1x896xf32>
    %24 = vector.broadcast %23 : vector<1x896xf32> to vector<8x896xf32>
    %25 = arith.mulf %22, %24 : vector<8x896xf32>
    %c0_11 = arith.constant 0 : index
    %c0_12 = arith.constant 0 : index
    %26 = vector.load %arg4[%c0_11, %c0_12] : memref<1x896xf32, #tpu.memory_space<vmem>>, vector<1x896xf32>
    %27 = vector.broadcast %26 : vector<1x896xf32> to vector<8x896xf32>
    %28 = arith.addf %25, %27 : vector<8x896xf32>
    %29 = tpu.iota {dimensions = array<i32: 1>} : vector<8x128xi32>
    %c128_i32 = arith.constant 128 : i32
    %30 = arith.muli %arg0, %c128_i32 : i32
    %31 = vector.broadcast %30 : i32 to vector<8x128xi32>
    %32 = arith.addi %31, %29 : vector<8x128xi32>
    %c4_i32 = arith.constant 4 : i32
    %33 = vector.broadcast %c4_i32 : i32 to vector<8x128xi32>
    %34 = arith.cmpi slt, %32, %33 : vector<8x128xi32>
    %cst_13 = arith.constant 1.000000e+00 : f32
    %cst_14 = arith.constant 0.000000e+00 : f32
    %35 = vector.broadcast %cst_13 : f32 to vector<8x128xf32>
    %36 = vector.broadcast %cst_14 : f32 to vector<8x128xf32>
    %37 = arith.select %34, %35, %36 : vector<8x128xi1>, vector<8x128xf32>
    %38 = vector.extract_strided_slice %28 {offsets = [0, 0], sizes = [8, 128], strides = [1, 1]} : vector<8x896xf32> to vector<8x128xf32>
    %cst_15 = arith.constant 5.000000e-01 : f32
    %39 = vector.broadcast %cst_15 : f32 to vector<8x128xf32>
    %40 = arith.mulf %39, %38 : vector<8x128xf32>
    %41 = math.tanh %40 : vector<8x128xf32>
    %cst_16 = arith.constant 5.000000e-01 : f32
    %42 = vector.broadcast %cst_16 : f32 to vector<8x128xf32>
    %43 = arith.mulf %42, %41 : vector<8x128xf32>
    %cst_17 = arith.constant 5.000000e-01 : f32
    %44 = vector.broadcast %cst_17 : f32 to vector<8x128xf32>
    %45 = arith.addf %43, %44 : vector<8x128xf32>
    %46 = arith.mulf %37, %45 : vector<8x128xf32>
    %47 = arith.subf %37, %46 : vector<8x128xf32>
    %48 = vector.extract_strided_slice %28 {offsets = [0, 128], sizes = [8, 128], strides = [1, 1]} : vector<8x896xf32> to vector<8x128xf32>
    %cst_18 = arith.constant 5.000000e-01 : f32
    %49 = vector.broadcast %cst_18 : f32 to vector<8x128xf32>
    %50 = arith.mulf %49, %48 : vector<8x128xf32>
    %51 = math.tanh %50 : vector<8x128xf32>
    %cst_19 = arith.constant 5.000000e-01 : f32
    %52 = vector.broadcast %cst_19 : f32 to vector<8x128xf32>
    %53 = arith.mulf %52, %51 : vector<8x128xf32>
    %cst_20 = arith.constant 5.000000e-01 : f32
    %54 = vector.broadcast %cst_20 : f32 to vector<8x128xf32>
    %55 = arith.addf %53, %54 : vector<8x128xf32>
    %56 = arith.mulf %47, %55 : vector<8x128xf32>
    %57 = arith.subf %47, %56 : vector<8x128xf32>
    %58 = vector.extract_strided_slice %28 {offsets = [0, 256], sizes = [8, 128], strides = [1, 1]} : vector<8x896xf32> to vector<8x128xf32>
    %cst_21 = arith.constant 5.000000e-01 : f32
    %59 = vector.broadcast %cst_21 : f32 to vector<8x128xf32>
    %60 = arith.mulf %59, %58 : vector<8x128xf32>
    %61 = math.tanh %60 : vector<8x128xf32>
    %cst_22 = arith.constant 5.000000e-01 : f32
    %62 = vector.broadcast %cst_22 : f32 to vector<8x128xf32>
    %63 = arith.mulf %62, %61 : vector<8x128xf32>
    %cst_23 = arith.constant 5.000000e-01 : f32
    %64 = vector.broadcast %cst_23 : f32 to vector<8x128xf32>
    %65 = arith.addf %63, %64 : vector<8x128xf32>
    %66 = arith.mulf %46, %65 : vector<8x128xf32>
    %67 = arith.subf %46, %66 : vector<8x128xf32>
    %68 = vector.extract_strided_slice %28 {offsets = [0, 384], sizes = [8, 128], strides = [1, 1]} : vector<8x896xf32> to vector<8x128xf32>
    %cst_24 = arith.constant 5.000000e-01 : f32
    %69 = vector.broadcast %cst_24 : f32 to vector<8x128xf32>
    %70 = arith.mulf %69, %68 : vector<8x128xf32>
    %71 = math.tanh %70 : vector<8x128xf32>
    %cst_25 = arith.constant 5.000000e-01 : f32
    %72 = vector.broadcast %cst_25 : f32 to vector<8x128xf32>
    %73 = arith.mulf %72, %71 : vector<8x128xf32>
    %cst_26 = arith.constant 5.000000e-01 : f32
    %74 = vector.broadcast %cst_26 : f32 to vector<8x128xf32>
    %75 = arith.addf %73, %74 : vector<8x128xf32>
    %76 = arith.mulf %57, %75 : vector<8x128xf32>
    %77 = vector.extract_strided_slice %28 {offsets = [0, 512], sizes = [8, 128], strides = [1, 1]} : vector<8x896xf32> to vector<8x128xf32>
    %cst_27 = arith.constant 5.000000e-01 : f32
    %78 = vector.broadcast %cst_27 : f32 to vector<8x128xf32>
    %79 = arith.mulf %78, %77 : vector<8x128xf32>
    %80 = math.tanh %79 : vector<8x128xf32>
    %cst_28 = arith.constant 5.000000e-01 : f32
    %81 = vector.broadcast %cst_28 : f32 to vector<8x128xf32>
    %82 = arith.mulf %81, %80 : vector<8x128xf32>
    %cst_29 = arith.constant 5.000000e-01 : f32
    %83 = vector.broadcast %cst_29 : f32 to vector<8x128xf32>
    %84 = arith.addf %82, %83 : vector<8x128xf32>
    %85 = arith.mulf %67, %84 : vector<8x128xf32>
    %86 = arith.addf %76, %85 : vector<8x128xf32>
    %87 = vector.extract_strided_slice %28 {offsets = [0, 640], sizes = [8, 128], strides = [1, 1]} : vector<8x896xf32> to vector<8x128xf32>
    %cst_30 = arith.constant 5.000000e-01 : f32
    %88 = vector.broadcast %cst_30 : f32 to vector<8x128xf32>
    %89 = arith.mulf %88, %87 : vector<8x128xf32>
    %90 = math.tanh %89 : vector<8x128xf32>
    %cst_31 = arith.constant 5.000000e-01 : f32
    %91 = vector.broadcast %cst_31 : f32 to vector<8x128xf32>
    %92 = arith.mulf %91, %90 : vector<8x128xf32>
    %cst_32 = arith.constant 5.000000e-01 : f32
    %93 = vector.broadcast %cst_32 : f32 to vector<8x128xf32>
    %94 = arith.addf %92, %93 : vector<8x128xf32>
    %95 = arith.mulf %56, %94 : vector<8x128xf32>
    %96 = arith.addf %86, %95 : vector<8x128xf32>
    %97 = vector.extract_strided_slice %28 {offsets = [0, 768], sizes = [8, 128], strides = [1, 1]} : vector<8x896xf32> to vector<8x128xf32>
    %cst_33 = arith.constant 5.000000e-01 : f32
    %98 = vector.broadcast %cst_33 : f32 to vector<8x128xf32>
    %99 = arith.mulf %98, %97 : vector<8x128xf32>
    %100 = math.tanh %99 : vector<8x128xf32>
    %cst_34 = arith.constant 5.000000e-01 : f32
    %101 = vector.broadcast %cst_34 : f32 to vector<8x128xf32>
    %102 = arith.mulf %101, %100 : vector<8x128xf32>
    %cst_35 = arith.constant 5.000000e-01 : f32
    %103 = vector.broadcast %cst_35 : f32 to vector<8x128xf32>
    %104 = arith.addf %102, %103 : vector<8x128xf32>
    %105 = arith.mulf %66, %104 : vector<8x128xf32>
    %106 = arith.addf %96, %105 : vector<8x128xf32>
    %c0_36 = arith.constant 0 : index
    %c0_37 = arith.constant 0 : index
    %107 = vector.load %arg5[%c0_36, %c0_37] : memref<8x128xf32, #tpu.memory_space<vmem>>, vector<8x128xf32>
    tpu.vector_store %arg5[%c0_36, %c0_37], %106 {strides = array<i32>} : memref<8x128xf32, #tpu.memory_space<vmem>>, vector<8x128xf32>,
    return
  }
  func.func @transform_0(%arg0: i32) -> (i32, i32) {
    %c0_i32 = arith.constant 0 : i32
    %c0_i32_0 = arith.constant 0 : i32
    %c0_i32_1 = arith.constant 0 : i32
    return %c0_i32, %c0_i32_0 : i32, i32
  }
  func.func @transform_1(%arg0: i32) -> (i32, i32) {
    %c0_i32 = arith.constant 0 : i32
    %c0_i32_0 = arith.constant 0 : i32
    return %c0_i32, %arg0 : i32, i32
  }
  func.func @transform_2(%arg0: i32) -> (i32, i32) {
    %c0_i32 = arith.constant 0 : i32
    %c0_i32_0 = arith.constant 0 : i32
    return %c0_i32, %arg0 : i32, i32
  }
  func.func @transform_3(%arg0: i32) -> (i32, i32) {
    %c0_i32 = arith.constant 0 : i32
    %c0_i32_0 = arith.constant 0 : i32
    return %c0_i32, %arg0 : i32, i32
  }
  func.func @transform_4(%arg0: i32) -> (i32, i32) {
    %c0_i32 = arith.constant 0 : i32
    %c0_i32_0 = arith.constant 0 : i32
    return %c0_i32, %arg0 : i32, i32
  }
}

</mosaic_0001>

<bundles_post_ra>
// kernel: nst_forward.1
= control target key start
LH: loop header
LB: loop body
LE: loop exit
PB: predicated region body
PF: predicated region fallthrough
CT: control target
= control target key end

     0   :  { %9 = vsyncpa [#allocation3], 0  ;;  %s1132_s18 = smov [#allocation2]   ;;  %s1133_s20 = smov 448   ;;  %s1350_s0 = inlined_call_operand.vmem [shape: bf16[8,128], index: 0, kind: input, shape index: {}]   ;;  %s1351_s1 = inlined_call_operand.hbm [shape: bf16[128,896], index: 1, kind: input, shape index: {}]   ;;  %s1352_s2 = inlined_call_operand.vmem [shape: f32[1,896], index: 2, kind: input, shape index: {}]   ;;  %s1353_s3 = inlined_call_operand.vmem [shape: f32[1,896], index: 3, kind: input, shape index: {}]   ;;  %s1354_s4 = inlined_call_operand.vmem [shape: f32[8,128], index: 4, kind: output, shape index: {}]  }
   0x1   :  { %s16_s17 = sshll.u32 %s1351_s1, 4  ;;  %s18_s19 = sshll.u32 %s1132_s18, 4  ;;  %s17_s17 = int_to_ptr.hbm [resolvable:$true] %s16_s17  ;;  %s19_s19 = int_to_ptr.vmem [resolvable:$true] %s18_s19 }
   0x2   :  { %s1134_s21 = smov 28  }
   0x3   :  { %24 = dma.hbm_to_vmem [thread:$0]  %s17_s17, 7168, %s19_s19, [#allocation3], %s1133_s20, %s1133_s20, %s1134_s21  }
   0x4   :  { %1130 = dma.done.wait [#allocation3], 7168  }
   0x5   :  { %1131 = vsyncadd [#allocation3], 4294960128  ;;  %v992_v0 = vld [vmem:[#allocation2 + $0x188] sm:$0xf]  ;;  %v1070_v1 = vld [vmem:[#allocation2 + $0x1a0] sm:$0xf0] }
   0x6   :  { %v1067_v2 = vld [vmem:[#allocation2 + $0x18c] sm:$0xf]  ;;  %v993_v3 = vor.u32 %v1070_v1, %v992_v0  ;;  %v994_v4 = vld [vmem:[#allocation2 + $0x1a4] sm:$0xf0]  ;;  %v1000_v5 = vld [vmem:[#allocation2 + $0x190] sm:$0xf] }
   0x7   :  { %v1071_v6 = vld [vmem:[#allocation2 + $0x1a8] sm:$0xf0]  ;;  %v997_v7 = vor.u32 %v1067_v2, %v994_v4  ;;  %v1068_v9 = vld [vmem:[#allocation2 + $0x194] sm:$0xf]  ;;  %v1002_v10 = vld [vmem:[#allocation2 + $0x1ac] sm:$0xf0] }
   0x8   :  { %v1001_v8 = vor.u32 %v1071_v6, %v1000_v5  ;;  %v964_v11 = vld [vmem:[#allocation2 + $0x150] sm:$0xf]  ;;  %386 = vmatpush.bf16.msra.mxu0 %v993_v3  ;;  %v1005_v12 = vor.u32 %v1068_v9, %v1002_v10  ;;  %v1063_v13 = vld [vmem:[#allocation2 + $0x168] sm:$0xf0]  ;;  %v1060_v14 = vld [vmem:[#allocation2 + $0x154] sm:$0xf] }
   0x9   :  { %v966_v15 = vld [vmem:[#allocation2 + $0x16c] sm:$0xf0]  ;;  %399 = vmatpush.bf16.msra.mxu1 %v997_v7  ;;  %v965_v16 = vor.u32 %v1063_v13, %v964_v11  ;;  %v972_v18 = vld [vmem:[#allocation2 + $0x158] sm:$0xf]  ;;  %v1064_v19 = vld [vmem:[#allocation2 + $0x170] sm:$0xf0] }
   0xa   :  { %412 = vmatpush.bf16.msra.mxu2 %v1001_v8  ;;  %v969_v17 = vor.u32 %v1060_v14, %v966_v15  ;;  %v1061_v20 = vld [vmem:[#allocation2 + $0x15c] sm:$0xf]  ;;  %425 = vmatpush.bf16.msra.mxu3 %v1005_v12  ;;  %v973_v21 = vor.u32 %v1064_v19, %v972_v18  ;;  %v974_v22 = vld [vmem:[#allocation2 + $0x174] sm:$0xf0]  ;;  %v1056_v24 = vld [vmem:[#allocation2 + $0x130] sm:$0xf0] }
   0xb   :  { %v936_v23 = vld [vmem:[#allocation2 + $0x118] sm:$0xf]  ;;  %v977_v25 = vor.u32 %v1061_v20, %v974_v22  ;;  %v1053_v26 = vld [vmem:[#allocation2 + $0x11c] sm:$0xf]  ;;  %v944_v28 = vld [vmem:[#allocation2 + $0x120] sm:$0xf] }
   0xc   :  { %v938_v27 = vld [vmem:[#allocation2 + $0x134] sm:$0xf0]  ;;  %387 = vmatpush.bf16.msra.mxu0 %v965_v16  ;;  %v937_v29 = vor.u32 %v1056_v24, %v936_v23  ;;  %v1057_v30 = vld [vmem:[#allocation2 + $0x138] sm:$0xf0]  ;;  %v1054_v31 = vld [vmem:[#allocation2 + $0x124] sm:$0xf] }
   0xd   :  { %v946_v32 = vld [vmem:[#allocation2 + $0x13c] sm:$0xf0]  ;;  %400 = vmatpush.bf16.msra.mxu1 %v969_v17  ;;  %v941_v33 = vor.u32 %v1053_v26, %v938_v27  ;;  %v945_v34 = vor.u32 %v1057_v30, %v944_v28  ;;  %v1049_v36 = vld [vmem:[#allocation2 + $0xf8] sm:$0xf0]  ;;  %v1046_v37 = vld [vmem:[#allocation2 + $0xe4] sm:$0xf] }
   0xe   :  { %413 = vmatpush.bf16.msra.mxu2 %v973_v21  ;;  %v908_v35 = vld [vmem:[#allocation2 + $0xe0] sm:$0xf]  ;;  %426 = vmatpush.bf16.msra.mxu3 %v977_v25  ;;  %v949_v38 = vor.u32 %v1054_v31, %v946_v32  ;;  %v916_v40 = vld [vmem:[#allocation2 + $0xe8] sm:$0xf]  ;;  %v1050_v41 = vld [vmem:[#allocation2 + $0x100] sm:$0xf0] }
   0xf   :  { %v910_v39 = vld [vmem:[#allocation2 + $0xfc] sm:$0xf0]  ;;  %v1047_v42 = vld [vmem:[#allocation2 + $0xec] sm:$0xf]  ;;  %v918_v43 = vld [vmem:[#allocation2 + $0x104] sm:$0xf0]  ;;  %v909_v44 = vor.u32 %v1049_v36, %v908_v35  ;;  %v917_v46 = vor.u32 %v1050_v41, %v916_v40 }
  0x10   :  { %388 = vmatpush.bf16.msra.mxu0 %v937_v29  ;;  %v913_v45 = vor.u32 %v1046_v37, %v910_v39  ;;  %v880_v47 = vld [vmem:[#allocation2 + $0xa8] sm:$0xf]  ;;  %v1042_v48 = vld [vmem:[#allocation2 + $0xc0] sm:$0xf0]  ;;  %v1039_v49 = vld [vmem:[#allocation2 + $0xac] sm:$0xf]  ;;  %v921_v50 = vor.u32 %v1047_v42, %v918_v43 }
  0x11   :  { %401 = vmatpush.bf16.msra.mxu1 %v941_v33  ;;  %v882_v51 = vld [vmem:[#allocation2 + $0xc4] sm:$0xf0]  ;;  %v888_v52 = vld [vmem:[#allocation2 + $0xb0] sm:$0xf]  ;;  %v1043_v53 = vld [vmem:[#allocation2 + $0xc8] sm:$0xf0]  ;;  %v881_v56 = vor.u32 %v1042_v48, %v880_v47 }
  0x12   :  { %414 = vmatpush.bf16.msra.mxu2 %v945_v34  ;;  %427 = vmatpush.bf16.msra.mxu3 %v949_v38  ;;  %v1040_v54 = vld [vmem:[#allocation2 + $0xb4] sm:$0xf]  ;;  %v890_v55 = vld [vmem:[#allocation2 + $0xcc] sm:$0xf0]  ;;  %v885_v57 = vor.u32 %v1039_v49, %v882_v51  ;;  %v889_v58 = vor.u32 %v1043_v53, %v888_v52  ;;  %v1035_v60 = vld [vmem:[#allocation2 + $0x88] sm:$0xf0] }
  0x13   :  { %v852_v59 = vld [vmem:[#allocation2 + $0x70] sm:$0xf]  ;;  %v1032_v61 = vld [vmem:[#allocation2 + $0x74] sm:$0xf]  ;;  %v893_v62 = vor.u32 %v1040_v54, %v890_v55  ;;  %v860_v0 = vld [vmem:[#allocation2 + $0x78] sm:$0xf] }
  0x14   :  { %389 = vmatpush.bf16.msra.mxu0 %v909_v44  ;;  %v854_v63 = vld [vmem:[#allocation2 + $0x8c] sm:$0xf0]  ;;  %v1036_v1 = vld [vmem:[#allocation2 + $0x90] sm:$0xf0]  ;;  %v1033_v2 = vld [vmem:[#allocation2 + $0x7c] sm:$0xf]  ;;  %v853_v4 = vor.u32 %v1035_v60, %v852_v59 }
  0x15   :  { %402 = vmatpush.bf16.msra.mxu1 %v913_v45  ;;  %v862_v3 = vld [vmem:[#allocation2 + $0x94] sm:$0xf0]  ;;  %v857_v5 = vor.u32 %v1032_v61, %v854_v63  ;;  %v861_v6 = vor.u32 %v1036_v1, %v860_v0  ;;  %v1028_v8 = vld [vmem:[#allocation2 + $0x50] sm:$0xf0]  ;;  %v1025_v9 = vld [vmem:[#allocation2 + $0x3c] sm:$0xf] }
  0x16   :  { %415 = vmatpush.bf16.msra.mxu2 %v917_v46  ;;  %428 = vmatpush.bf16.msra.mxu3 %v921_v50  ;;  %v824_v7 = vld [vmem:[#allocation2 + $0x38] sm:$0xf]  ;;  %v865_v10 = vor.u32 %v1033_v2, %v862_v3  ;;  %v832_v12 = vld [vmem:[#allocation2 + $0x40] sm:$0xf]  ;;  %v1029_v13 = vld [vmem:[#allocation2 + $0x58] sm:$0xf0] }
  0x17   :  { %v826_v11 = vld [vmem:[#allocation2 + $0x54] sm:$0xf0]  ;;  %v1026_v14 = vld [vmem:[#allocation2 + $0x44] sm:$0xf]  ;;  %v834_v15 = vld [vmem:[#allocation2 + $0x5c] sm:$0xf0]  ;;  %v825_v16 = vor.u32 %v1028_v8, %v824_v7  ;;  %v833_v20 = vor.u32 %v1029_v13, %v832_v12 }
  0x18   :  { %390 = vmatpush.bf16.msra.mxu0 %v881_v56  ;;  %v796_v17 = vld [vmem:[#allocation2] sm:$0xf]  ;;  %v1021_v18 = vld [vmem:[#allocation2 + $0x18] sm:$0xf0]  ;;  %v829_v19 = vor.u32 %v1025_v9, %v826_v11  ;;  %v1018_v21 = vld [vmem:[#allocation2 + $0x4] sm:$0xf]  ;;  %v837_v24 = vor.u32 %v1026_v14, %v834_v15 }
  0x19   :  { %403 = vmatpush.bf16.msra.mxu1 %v885_v57  ;;  %v798_v22 = vld [vmem:[#allocation2 + $0x1c] sm:$0xf0]  ;;  %v804_v23 = vld [vmem:[#allocation2 + $0x8] sm:$0xf]  ;;  %v1022_v25 = vld [vmem:[#allocation2 + $0x20] sm:$0xf0]  ;;  %v797_v31 = vor.u32 %v1021_v18, %v796_v17 }
  0x1a   :  { %416 = vmatpush.bf16.msra.mxu2 %v889_v58  ;;  %429 = vmatpush.bf16.msra.mxu3 %v893_v62  ;;  %v1019_v26 = vld [vmem:[#allocation2 + $0xc] sm:$0xf]  ;;  %v806_v27 = vld [vmem:[#allocation2 + $0x24] sm:$0xf0]  ;;  %v1008_v28 = vld [vmem:[#allocation2 + $0x198] sm:$0xf]  ;;  %v801_v35 = vor.u32 %v1018_v21, %v798_v22  ;;  %v805_v36 = vor.u32 %v1022_v25, %v804_v23 }
  0x1b   :  { %v1072_v29 = vld [vmem:[#allocation2 + $0x1b0] sm:$0xf0]  ;;  %v1069_v30 = vld [vmem:[#allocation2 + $0x19c] sm:$0xf]  ;;  %v1010_v32 = vld [vmem:[#allocation2 + $0x1b4] sm:$0xf0]  ;;  %v809_v37 = vor.u32 %v1019_v26, %v806_v27 }
  0x1c   :  { %391 = vmatpush.bf16.msra.mxu0 %v853_v4  ;;  %v1016_v33 = vld [vmem:[#allocation2 + $0x1a0] sm:$0xf]  ;;  %v1073_v34 = vld [vmem:[#allocation2 + $0x1b8] sm:$0xf0]  ;;  %v1009_v38 = vor.u32 %v1072_v29, %v1008_v28  ;;  %v1013_v39 = vor.u32 %v1069_v30, %v1010_v32  ;;  %v1062_v43 = vld [vmem:[#allocation2 + $0x164] sm:$0xf] }
  0x1d   :  { %404 = vmatpush.bf16.msra.mxu1 %v857_v5  ;;  %v1017_v40 = vor.u32 %v1073_v34, %v1016_v33  ;;  %v980_v41 = vld [vmem:[#allocation2 + $0x160] sm:$0xf]  ;;  %v1065_v42 = vld [vmem:[#allocation2 + $0x178] sm:$0xf0]  ;;  %v988_v45 = vld [vmem:[#allocation2 + $0x168] sm:$0xf] }
  0x1e   :  { %417 = vmatpush.bf16.msra.mxu2 %v861_v6  ;;  %430 = vmatpush.bf16.msra.mxu3 %v865_v10  ;;  %v982_v44 = vld [vmem:[#allocation2 + $0x17c] sm:$0xf0]  ;;  %v1066_v46 = vld [vmem:[#allocation2 + $0x180] sm:$0xf0]  ;;  %v981_v48 = vor.u32 %v1065_v42, %v980_v41  ;;  %v952_v51 = vld [vmem:[#allocation2 + $0x128] sm:$0xf] }
  0x1f   :  { %v1167_v47 = vld [vmem:[%s1350_s0] sm:$0xf]  ;;  %v985_v49 = vor.u32 %v1062_v43, %v982_v44  ;;  %v989_v50 = vor.u32 %v1066_v46, %v988_v45  ;;  %v1058_v52 = vld [vmem:[#allocation2 + $0x140] sm:$0xf0]  ;;  %v1055_v53 = vld [vmem:[#allocation2 + $0x12c] sm:$0xf] }
  0x20   :  { %392 = vmatpush.bf16.msra.mxu0 %v825_v16  ;;  %v954_v54 = vld [vmem:[#allocation2 + $0x144] sm:$0xf0]  ;;  %v960_v55 = vld [vmem:[#allocation2 + $0x130] sm:$0xf]  ;;  %v1059_v56 = vld [vmem:[#allocation2 + $0x148] sm:$0xf0]  ;;  %v953_v57 = vor.u32 %v1058_v52, %v952_v51 }
  0x21   :  { %405 = vmatpush.bf16.msra.mxu1 %v829_v19  ;;  %v957_v58 = vor.u32 %v1055_v53, %v954_v54  ;;  %v961_v59 = vor.u32 %v1059_v56, %v960_v55  ;;  %v924_v60 = vld [vmem:[#allocation2 + $0xf0] sm:$0xf]  ;;  %v1051_v61 = vld [vmem:[#allocation2 + $0x108] sm:$0xf0]  ;;  %v1048_v62 = vld [vmem:[#allocation2 + $0xf4] sm:$0xf] }
  0x22   :  { %418 = vmatpush.bf16.msra.mxu2 %v833_v20  ;;  %431 = vmatpush.bf16.msra.mxu3 %v837_v24  ;;  %v926_v63 = vld [vmem:[#allocation2 + $0x10c] sm:$0xf0]  ;;  %v932_v0 = vld [vmem:[#allocation2 + $0xf8] sm:$0xf]  ;;  %v1052_v1 = vld [vmem:[#allocation2 + $0x110] sm:$0xf0]  ;;  %v925_v2 = vor.u32 %v1051_v61, %v924_v60 }
  0x23   :  { %v929_v3 = vor.u32 %v1048_v62, %v926_v63  ;;  %v933_v4 = vor.u32 %v1052_v1, %v932_v0  ;;  %v896_v5 = vld [vmem:[#allocation2 + $0xb8] sm:$0xf]  ;;  %v1044_v6 = vld [vmem:[#allocation2 + $0xd0] sm:$0xf0]  ;;  %v1041_v7 = vld [vmem:[#allocation2 + $0xbc] sm:$0xf] }
  0x24   :  { %393 = vmatpush.bf16.msra.mxu0 %v797_v31  ;;  %v898_v8 = vld [vmem:[#allocation2 + $0xd4] sm:$0xf0]  ;;  %v904_v9 = vld [vmem:[#allocation2 + $0xc0] sm:$0xf]  ;;  %v1045_v10 = vld [vmem:[#allocation2 + $0xd8] sm:$0xf0]  ;;  %v897_v11 = vor.u32 %v1044_v6, %v896_v5 }
  0x25   :  { %406 = vmatpush.bf16.msra.mxu1 %v801_v35  ;;  %v901_v12 = vor.u32 %v1041_v7, %v898_v8  ;;  %v905_v13 = vor.u32 %v1045_v10, %v904_v9  ;;  %v868_v14 = vld [vmem:[#allocation2 + $0x80] sm:$0xf]  ;;  %v1037_v15 = vld [vmem:[#allocation2 + $0x98] sm:$0xf0]  ;;  %v1034_v16 = vld [vmem:[#allocation2 + $0x84] sm:$0xf] }
  0x26   :  { %419 = vmatpush.bf16.msra.mxu2 %v805_v36  ;;  %432 = vmatpush.bf16.msra.mxu3 %v809_v37  ;;  %v870_v17 = vld [vmem:[#allocation2 + $0x9c] sm:$0xf0]  ;;  %v876_v18 = vld [vmem:[#allocation2 + $0x88] sm:$0xf]  ;;  %v1038_v19 = vld [vmem:[#allocation2 + $0xa0] sm:$0xf0]  ;;  %v869_v20 = vor.u32 %v1037_v15, %v868_v14 }
  0x27   :  { %394 = vmatmul.bf16.vlgmr.msra.gmra.mxu0 %v1167_v47  ;;  %v873_v21 = vor.u32 %v1034_v16, %v870_v17  ;;  %v877_v22 = vor.u32 %v1038_v19, %v876_v18  ;;  %v840_v23 = vld [vmem:[#allocation2 + $0x48] sm:$0xf]  ;;  %v1030_v24 = vld [vmem:[#allocation2 + $0x60] sm:$0xf0]  ;;  %v1027_v25 = vld [vmem:[#allocation2 + $0x4c] sm:$0xf] }
  0x28   :  { %438 = vmatpush.bf16.msrb.mxu0 %v1009_v38  ;;  %407 = vmatmul.bf16.vlgmr.msra.gmra.mxu1 %v1167_v47  ;;  %v842_v26 = vld [vmem:[#allocation2 + $0x64] sm:$0xf0]  ;;  %v848_v27 = vld [vmem:[#allocation2 + $0x50] sm:$0xf]  ;;  %v1031_v28 = vld [vmem:[#allocation2 + $0x68] sm:$0xf0]  ;;  %v841_v29 = vor.u32 %v1030_v24, %v840_v23 }
  0x29   :  { %451 = vmatpush.bf16.msrb.mxu1 %v1013_v39  ;;  %420 = vmatmul.bf16.vlgmr.msra.gmra.mxu2 %v1167_v47  ;;  %v845_v30 = vor.u32 %v1027_v25, %v842_v26  ;;  %v849_v31 = vor.u32 %v1031_v28, %v848_v27  ;;  %v812_v32 = vld [vmem:[#allocation2 + $0x10] sm:$0xf]  ;;  %v1023_v33 = vld [vmem:[#allocation2 + $0x28] sm:$0xf0]  ;;  %v1020_v34 = vld [vmem:[#allocation2 + $0x14] sm:$0xf] }
  0x2a   :  { %464 = vmatpush.bf16.msrb.mxu2 %v1017_v40  ;;  %433 = vmatmul.bf16.vlgmr.msra.gmra.mxu3 %v1167_v47  ;;  %v814_v35 = vld [vmem:[#allocation2 + $0x2c] sm:$0xf0]  ;;  %v820_v36 = vld [vmem:[#allocation2 + $0x18] sm:$0xf]  ;;  %v1024_v37 = vld [vmem:[#allocation2 + $0x30] sm:$0xf0]  ;;  %v813_v38 = vor.u32 %v1023_v33, %v812_v32 }
  0x2b   :  { %v817_v39 = vor.u32 %v1020_v34, %v814_v35  ;;  %v821_v40 = vor.u32 %v1024_v37, %v820_v36 }
  0x2c   :  { %439 = vmatpush.bf16.msrb.mxu0 %v981_v48 }
  0x2d   :  { %452 = vmatpush.bf16.msrb.mxu1 %v985_v49 }
  0x2e   :  { %465 = vmatpush.bf16.msrb.mxu2 %v989_v50 }
  0x30   :  { %440 = vmatpush.bf16.msrb.mxu0 %v953_v57 }
  0x31   :  { %453 = vmatpush.bf16.msrb.mxu1 %v957_v58 }
  0x32   :  { %466 = vmatpush.bf16.msrb.mxu2 %v961_v59 }
  0x34   :  { %441 = vmatpush.bf16.msrb.mxu0 %v925_v2 }
  0x35   :  { %454 = vmatpush.bf16.msrb.mxu1 %v929_v3 }
  0x36   :  { %467 = vmatpush.bf16.msrb.mxu2 %v933_v4 }
  0x38   :  { %442 = vmatpush.bf16.msrb.mxu0 %v897_v11 }
  0x39   :  { %455 = vmatpush.bf16.msrb.mxu1 %v901_v12 }
  0x3a   :  { %468 = vmatpush.bf16.msrb.mxu2 %v905_v13 }
  0x3c   :  { %443 = vmatpush.bf16.msrb.mxu0 %v869_v20 }
  0x3d   :  { %456 = vmatpush.bf16.msrb.mxu1 %v873_v21 }
  0x3e   :  { %469 = vmatpush.bf16.msrb.mxu2 %v877_v22 }
  0x40   :  { %444 = vmatpush.bf16.msrb.mxu0 %v841_v29 }
  0x41   :  { %457 = vmatpush.bf16.msrb.mxu1 %v845_v30 }
  0x42   :  { %470 = vmatpush.bf16.msrb.mxu2 %v849_v31 }
  0x44   :  { %445 = vmatpush.bf16.msrb.mxu0 %v813_v38 }
  0x45   :  { %458 = vmatpush.bf16.msrb.mxu1 %v817_v39 }
  0x46   :  { %471 = vmatpush.bf16.msrb.mxu2 %v821_v40 }
  0x47   :  { %446 = vmatmul.bf16.vlgmr.msrb.gmra.mxu0 %v1167_v47 }
  0x48   :  { %459 = vmatmul.bf16.vlgmr.msrb.gmra.mxu1 %v1167_v47 }
  0x49   :  { %472 = vmatmul.bf16.vlgmr.msrb.gmra.mxu2 %v1167_v47 }
  0xa4   :  { %v1176_v41 = vpop.f32.mrf.mxu0 }
  0xa5   :  { %v1178_v42 = vpop.f32.mrf.mxu1  ;;  %v477_v43 = vrot.slane %v1176_v41, 4  ;;  %v526_v44 = vmul.f32 %v1176_v41, %v1176_v41 }
  0xa6   :  { %v483_v45 = vrot.slane %v1178_v42, 4  ;;  %v527_v46 = vmul.f32 %v1178_v42, %v1178_v42 }
  0xa7   :  { %v478_v48 = vadd.f32 %v477_v43, %v1176_v41  ;;  %v533_v49 = vrot.slane %v526_v44, 4 }
  0xa8   :  { %v484_v50 = vadd.f32 %v483_v45, %v1178_v42  ;;  %v539_v47 = vrot.slane %v527_v46, 4 }
  0xa9   :  { %v479_v51 = vrot.slane %v478_v48, 2  ;;  %v534_v52 = vadd.f32 %v533_v49, %v526_v44 }
  0xaa   :  { %v485_v53 = vrot.slane %v484_v50, 2  ;;  %v540_v54 = vadd.f32 %v539_v47, %v527_v46  ;;  %v1221_v47 = vld [vmem:[%s1352_s2] sm:$0xff] }
  0xab   :  { %v480_v55 = vadd.f32 %v479_v51, %v478_v48  ;;  %v535_v56 = vrot.slane %v534_v52, 2  ;;  %v1226_v51 = vld [vmem:[%s1353_s3] sm:$0xff] }
  0xac   :  { %v486_v57 = vadd.f32 %v485_v53, %v484_v50  ;;  %v541_v58 = vrot.slane %v540_v54, 2  ;;  %v1188_v59 = vpop.f32.mrf.mxu2  ;;  %v397_v63 = vpop.f32.mrf.mxu0 }
  0xad   :  { %v1190_v60 = vpop.f32.mrf.mxu3  ;;  %v489_v61 = vrot.slane %v1188_v59, 4  ;;  %v528_v62 = vmul.f32 %v1188_v59, %v1188_v59  ;;  %v410_v0 = vpop.f32.mrf.mxu1  ;;  %v481_v1 = vrot.slane %v480_v55, 1  ;;  %v536_v2 = vadd.f32 %v535_v56, %v534_v52 }
  0xae   :  { %v487_v3 = vrot.slane %v486_v57, 1  ;;  %v542_v4 = vadd.f32 %v541_v58, %v540_v54  ;;  %v495_v15 = vrot.slane %v1190_v60, 4  ;;  %v529_v22 = vmul.f32 %v1190_v60, %v1190_v60 }
  0xaf   :  { %v490_v5 = vadd.f32 %v489_v61, %v1188_v59  ;;  %v545_v6 = vrot.slane %v528_v62, 4  ;;  %v482_v7 = vadd.f32 %v481_v1, %v480_v55  ;;  %v537_v8 = vrot.slane %v536_v2, 1 }
  0xb0   :  { %v488_v9 = vadd.f32 %v487_v3, %v486_v57  ;;  %v543_v10 = vrot.slane %v542_v4, 1  ;;  %v496_v32 = vadd.f32 %v495_v15, %v1190_v60  ;;  %v551_v35 = vrot.slane %v529_v22, 4 }
  0xb1   :  { %v491_v11 = vrot.slane %v490_v5, 2  ;;  %v546_v12 = vadd.f32 %v545_v6, %v528_v62  ;;  %v1196_v13 = vmul.f32 0.125, %v482_v7  ;;  %v538_v14 = vadd.f32 %v537_v8, %v536_v2 }
  0xb2   :  { %v1199_v16 = vmul.f32 0.125, %v488_v9  ;;  %v544_v17 = vadd.f32 %v543_v10, %v542_v4  ;;  %v497_v38 = vrot.slane %v496_v32, 2  ;;  %v552_v43 = vadd.f32 %v551_v35, %v529_v22 }
  0xb3   :  { %v492_v18 = vadd.f32 %v491_v11, %v490_v5  ;;  %v547_v19 = vrot.slane %v546_v12, 2  ;;  %v575_v20 = vmul.f32 0.125, %v538_v14  ;;  %v582_v21 = vmul.f32 %v1196_v13, %v1196_v13 }
  0xb4   :  { %v423_v23 = vpop.f32.mrf.mxu2  ;;  %v576_v25 = vmul.f32 0.125, %v544_v17  ;;  %v583_v26 = vmul.f32 %v1199_v16, %v1199_v16  ;;  %v498_v46 = vadd.f32 %v497_v38, %v496_v32  ;;  %v553_v49 = vrot.slane %v552_v43, 2 }
  0xb5   :  { %v436_v24 = vpop.f32.mrf.mxu3  ;;  %v493_v27 = vrot.slane %v492_v18, 1  ;;  %v589_v28 = vsub.f32 %v575_v20, %v582_v21  ;;  %v548_v29 = vadd.f32 %v547_v19, %v546_v12  ;;  %v740_v54 = vlaneseq }
  0xb6   :  { %v590_v30 = vsub.f32 %v576_v25, %v583_v26  ;;  %v499_v50 = vrot.slane %v498_v46, 1  ;;  %v554_v53 = vadd.f32 %v553_v49, %v552_v43  ;;  %v696_v58 = vperm.slane %v1221_v47, 0 }
  0xb7   :  { %v494_v31 = vadd.f32 %v493_v27, %v492_v18  ;;  %v596_v33 = vmax.f32 %v589_v28, 0.0  ;;  %v549_v34 = vrot.slane %v548_v29, 1  ;;  %v719_v61 = vperm.slane %v1226_v51, 0 }
  0xb8   :  { %v597_v36 = vmax.f32 %v590_v30, 0.0  ;;  %v500_v55 = vadd.f32 %v499_v50, %v498_v46  ;;  %v555_v57 = vrot.slane %v554_v53, 1  ;;  %v697_v62 = vperm.slane %v1221_v47, 1 }
  0xb9   :  { %v1208_v37 = vmul.f32 0.125, %v494_v31  ;;  %v1210_v39 = vadd.f32 1e-05, %v596_v33  ;;  %v550_v40 = vadd.f32 %v549_v34, %v548_v29  ;;  %v720_v1 = vperm.slane %v1226_v51, 1 }
  0xba   :  { %v1212_v44 = vadd.f32 1e-05, %v597_v36  ;;  %v1231_v63 = vmul.f32 0.125, %v500_v55  ;;  %v556_v3 = vadd.f32 %v555_v57, %v554_v53  ;;  %v603_v6 = vsub.f32 %v1176_v41, %v1196_v13 }
  0xbb   :  { %v584_v45 = vmul.f32 %v1208_v37, %v1208_v37  ;;  %1078 = vrsqrt.f32 %v1210_v39  ;;  %v577_v48 = vmul.f32 0.125, %v550_v40  ;;  %v1241_v8 = vand.u32 127, %v740_v54 }
  0xbc   :  { %1080 = vrsqrt.f32 %v1212_v44  ;;  %v585_v9 = vmul.f32 %v1231_v63, %v1231_v63  ;;  %v604_v11 = vsub.f32 %v1178_v42, %v1199_v16  ;;  %v698_v14 = vperm.slane %v1221_v47, 2 }
  0xbd   :  { %v591_v52 = vsub.f32 %v577_v48, %v584_v45  ;;  %v578_v41 = vmul.f32 0.125, %v556_v3  ;;  %vm623_vm0 = vweird.f32 %v1210_v39  ;;  %vm633_vm2 = vweird.f32 %v1212_v44 }
  0xbe   :  { %vm745_vm7 = vcmp.lt.s32.totalorder %v1241_v8, 4  ;;  %v722_v8 = vperm.slane %v1226_v51, 3 }
  0xbf   :  { %v598_v56 = vmax.f32 %v591_v52, 0.0  ;;  %v592_v20 = vsub.f32 %v578_v41, %v585_v9 }
  0xc1   :  { %v1079_v0 = vpop.eup %1078  ;;  %v1234_v2 = vadd.f32 1e-05, %v598_v56  ;;  %v599_v27 = vmax.f32 %v592_v20, 0.0 }
  0xc2   :  { %v1081_v5 = vpop.eup %1080  ;;  %v618_v7 = vmul.f32 %v1079_v0, %v1210_v39  ;;  %vm624_vm1 = vweird.f32 %v1079_v0 }
  0xc3   :  { %v628_v12 = vmul.f32 %v1081_v5, %v1212_v44  ;;  %1082 = vrsqrt.f32 %v1234_v2  ;;  %vm634_vm3 = vweird.f32 %v1081_v5  ;;  %v1265_v38 = vadd.f32 1e-05, %v599_v27  ;;  %vm625_vm4 = vmor %vm623_vm0, %vm624_vm1 }
  0xc4   :  { %v1236_v4 = vpop.f32.mrf.mxu0  ;;  %v619_v15 = vmul.f32 %v1079_v0, %v618_v7  ;;  %vm635_vm5 = vmor %vm633_vm2, %vm634_vm3  ;;  %vm643_vm6 = vweird.f32 %v1234_v2 }
  0xc5   :  { %v1245_v10 = vpop.f32.mrf.mxu1  ;;  %v501_v13 = vrot.slane %v1236_v4, 4  ;;  %v530_v17 = vmul.f32 %v1236_v4, %v1236_v4  ;;  %v629_v18 = vmul.f32 %v1081_v5, %v628_v12  ;;  %1084 = vrsqrt.f32 %v1265_v38 }
  0xc6   :  { %v507_v19 = vrot.slane %v1245_v10, 4  ;;  %v531_v42 = vmul.f32 %v1245_v10, %v1245_v10  ;;  %v620_v16 = vmul.f32 0.5, %v619_v15  ;;  %vm653_vm10 = vweird.f32 %v1265_v38 }
  0xc7   :  { %v502_v21 = vadd.f32 %v501_v13, %v1236_v4  ;;  %v557_v22 = vrot.slane %v530_v17, 4  ;;  %v630_v23 = vmul.f32 0.5, %v629_v18 }
  0xc8   :  { %v508_v24 = vadd.f32 %v507_v19, %v1245_v10  ;;  %v563_v25 = vrot.slane %v531_v42, 4  ;;  %v621_v26 = vsub.f32 1.5, %v620_v16 }
  0xc9   :  { %v503_v28 = vrot.slane %v502_v21, 2  ;;  %v558_v29 = vadd.f32 %v557_v22, %v530_v17  ;;  %v1083_v31 = vpop.eup %1082  ;;  %v631_v32 = vsub.f32 1.5, %v630_v23 }
  0xca   :  { %v509_v33 = vrot.slane %v508_v24, 2  ;;  %v622_v35 = vmul.f32 %v1079_v0, %v621_v26  ;;  %v638_v36 = vmul.f32 %v1083_v31, %v1234_v2  ;;  %v564_v40 = vadd.f32 %v563_v25, %v531_v42 }
  0xcb   :  { %v632_v45 = vmul.f32 %v1081_v5, %v631_v32  ;;  %v504_v46 = vadd.f32 %v503_v28, %v502_v21  ;;  %v559_v48 = vrot.slane %v558_v29, 2  ;;  %vm644_vm8 = vweird.f32 %v1083_v31  ;;  %v1085_v19 = vpop.eup %1084 }
  0xcc   :  { %v1261_v30 = vpop.f32.mrf.mxu2  ;;  %v449_v34 = vpop.f32.mrf.mxu0  ;;  %v510_v49 = vadd.f32 %v509_v33, %v508_v24  ;;  %v626_v50 = vsel %vm625_vm4, %v1079_v0, %v622_v35  ;;  %v639_v52 = vmul.f32 %v1083_v31, %v638_v36  ;;  %v565_v7 = vrot.slane %v564_v40, 2  ;;  %vm645_vm9 = vmor %vm643_vm6, %vm644_vm8 }
  0xcd   :  { %v462_v43 = vpop.f32.mrf.mxu1  ;;  %v687_v53 = vmul.f32 %v626_v50, %v603_v6  ;;  %v636_v54 = vsel %vm635_vm5, %v1081_v5, %v632_v45  ;;  %v505_v55 = vrot.slane %v504_v46, 1  ;;  %v560_v56 = vadd.f32 %v559_v48, %v558_v29 }
  0xce   :  { %v688_v39 = vmul.f32 %v636_v54, %v604_v11  ;;  %v640_v57 = vmul.f32 0.5, %v639_v52  ;;  %v511_v3 = vrot.slane %v510_v49, 1  ;;  %v513_v12 = vrot.slane %v1261_v30, 4 }
  0xcf   :  { %v710_v0 = vmul.f32 %v696_v58, %v687_v53  ;;  %v506_v44 = vadd.f32 %v505_v55, %v504_v46  ;;  %v561_v9 = vrot.slane %v560_v56, 1  ;;  %v566_v18 = vadd.f32 %v565_v7, %v564_v40 }
  0xd0   :  { %v711_v15 = vmul.f32 %v697_v62, %v688_v39  ;;  %v641_v6 = vsub.f32 1.5, %v640_v57  ;;  %v512_v5 = vadd.f32 %v511_v3, %v510_v49  ;;  %v605_v42 = vsub.f32 %v1188_v59, %v1208_v37 }
  0xd1   :  { %v733_v11 = vadd.f32 %v719_v61, %v710_v0  ;;  %v1282_v13 = vmul.f32 0.125, %v506_v44  ;;  %v562_v17 = vadd.f32 %v561_v9, %v560_v56  ;;  %v721_v62 = vperm.slane %v1226_v51, 2 }
  0xd2   :  { %v734_v58 = vadd.f32 %v720_v1, %v711_v15  ;;  %v642_v16 = vmul.f32 %v1083_v31, %v641_v6  ;;  %v648_v61 = vmul.f32 %v1085_v19, %v1265_v38  ;;  %v1292_v22 = vmul.f32 0.125, %v512_v5 }
  0xd3   :  { %v747_v20 = vmul.f32 0.5, %v733_v11  ;;  %v579_v21 = vmul.f32 0.125, %v562_v17  ;;  %v586_v1 = vmul.f32 %v1282_v13, %v1282_v13  ;;  %v514_v25 = vadd.f32 %v513_v12, %v1261_v30 }
  0xd4   :  { %v475_v41 = vpop.f32.mrf.mxu2  ;;  %v753_v23 = vmul.f32 0.5, %v734_v58  ;;  %v646_v24 = vsel %vm645_vm9, %v1083_v31, %v642_v16  ;;  %v649_v37 = vmul.f32 %v1085_v19, %v648_v61  ;;  %v567_v26 = vrot.slane %v566_v18, 1 }
  0xd5   :  { %1086 = vtanh.f32 %v747_v20  ;;  %v689_v59 = vmul.f32 %v646_v24, %v605_v42  ;;  %vm654_vm11 = vweird.f32 %v1085_v19  ;;  %v593_v2 = vsub.f32 %v579_v21, %v586_v1 }
  0xd6   :  { %1088 = vtanh.f32 %v753_v23  ;;  %v650_v28 = vmul.f32 0.5, %v649_v37  ;;  %v568_v29 = vadd.f32 %v567_v26, %v566_v18  ;;  %v587_v31 = vmul.f32 %v1292_v22, %v1292_v22  ;;  %vm1308_vm12 = vmor %vm653_vm10, %vm654_vm11 }
  0xd7   :  { %v712_v27 = vmul.f32 %v698_v14, %v689_v59  ;;  %v600_v32 = vmax.f32 %v593_v2, 0.0  ;;  %v515_v33 = vrot.slane %v514_v25, 2  ;;  %v532_v34 = vmul.f32 %v1261_v30, %v1261_v30 }
  0xd8   :  { %v1135_v35 = vmov 0.0   ;;  %v651_v43 = vsub.f32 1.5, %v650_v28  ;;  %v580_v45 = vmul.f32 0.125, %v568_v29  ;;  %v699_v46 = vperm.slane %v1221_v47, 3 }
  0xd9   :  { %v746_v36 = vsel %vm745_vm7, 1.0, %v1135_v35  ;;  %v735_v40 = vadd.f32 %v721_v62, %v712_v27  ;;  %v614_v48 = vadd.f32 1e-05, %v600_v32  ;;  %v516_v49 = vadd.f32 %v515_v33, %v514_v25 }
  0xda   :  { %v569_v50 = vrot.slane %v532_v34, 4  ;;  %v652_v54 = vmul.f32 %v1085_v19, %v651_v43  ;;  %v594_v55 = vsub.f32 %v580_v45, %v587_v31  ;;  %v606_v38 = vsub.f32 %v1190_v60, %v1231_v63 }
  0xdb   :  { %v1087_v52 = vpop.eup %1086  ;;  %v759_v53 = vmul.f32 0.5, %v735_v40  ;;  %1090 = vrsqrt.f32 %v614_v48  ;;  %v517_v57 = vrot.slane %v516_v49, 1  ;;  %vm663_vm14 = vweird.f32 %v614_v48 }
  0xdc   :  { %v1089_v56 = vpop.eup %1088  ;;  %v749_v39 = vmul.f32 0.5, %v1087_v52  ;;  %v656_v7 = vsel %vm1308_vm12, %v1085_v19, %v652_v54  ;;  %v601_v0 = vmax.f32 %v594_v55, 0.0  ;;  %v570_v15 = vadd.f32 %v569_v50, %v532_v34 }
  0xdd   :  { %v755_v3 = vmul.f32 0.5, %v1089_v56  ;;  %1092 = vtanh.f32 %v759_v53  ;;  %v690_v9 = vmul.f32 %v656_v7, %v606_v38  ;;  %v518_v12 = vadd.f32 %v517_v57, %v516_v49 }
  0xde   :  { %v750_v44 = vadd.f32 0.5, %v749_v39  ;;  %v615_v6 = vadd.f32 1e-05, %v601_v0  ;;  %v571_v11 = vrot.slane %v570_v15, 2  ;;  %v700_v40 = vperm.slane %v1221_v47, 4 }
  0xdf   :  { %v713_v41 = vmul.f32 %v699_v46, %v690_v9  ;;  %v1320_v17 = vmul.f32 0.125, %v518_v12  ;;  %v756_v18 = vadd.f32 0.5, %v755_v3  ;;  %v723_v49 = vperm.slane %v1226_v51, 4 }
  0xe0   :  { %v1318_v5 = vmul.f32 %v750_v44, %v746_v36  ;;  %1094 = vrsqrt.f32 %v615_v6  ;;  %v572_v42 = vadd.f32 %v571_v11, %v570_v15  ;;  %vm673_vm1 = vweird.f32 %v615_v6 }
  0xe1   :  { %v1091_v60 = vpop.eup %1090  ;;  %v736_v58 = vadd.f32 %v722_v8, %v713_v41  ;;  %v588_v24 = vmul.f32 %v1320_v17, %v1320_v17  ;;  %v724_v57 = vperm.slane %v1226_v51, 5 }
  0xe2   :  { %v752_v63 = vsub.f32 %v746_v36, %v1318_v5  ;;  %v658_v16 = vmul.f32 %v1091_v60, %v614_v48  ;;  %v573_v21 = vrot.slane %v572_v42, 1  ;;  %vm664_vm13 = vweird.f32 %v1091_v60 }
  0xe3   :  { %v1093_v19 = vpop.eup %1092  ;;  %v765_v61 = vmul.f32 0.5, %v736_v58  ;;  %v607_v36 = vsub.f32 %v1236_v4, %v1282_v13  ;;  %vm665_vm15 = vmor %vm663_vm14, %vm664_vm13  ;;  %v608_v4 = vsub.f32 %v1245_v10, %v1292_v22  ;;  %v701_v13 = vperm.slane %v1221_v47, 5 }
  0xe4   :  { %v1323_v62 = vmul.f32 %v756_v18, %v752_v63  ;;  %v761_v20 = vmul.f32 0.5, %v1093_v19  ;;  %v659_v23 = vmul.f32 %v1091_v60, %v658_v16  ;;  %v574_v59 = vadd.f32 %v573_v21, %v572_v42 }
  0xe5   :  { %1096 = vtanh.f32 %v765_v61 }
  0xe6   :  { %v762_v1 = vadd.f32 0.5, %v761_v20  ;;  %v758_v25 = vsub.f32 %v752_v63, %v1323_v62  ;;  %v1095_v37 = vpop.eup %1094  ;;  %v660_v26 = vmul.f32 0.5, %v659_v23  ;;  %v581_v28 = vmul.f32 0.125, %v574_v59 }
  0xe7   :  { %v668_v27 = vmul.f32 %v1095_v37, %v615_v6  ;;  %vm674_vm0 = vweird.f32 %v1095_v37  ;;  %v702_v63 = vperm.slane %v1221_v47, 6  ;;  %v725_v20 = vperm.slane %v1226_v51, 6 }
  0xe8   :  { %v1329_v2 = vmul.f32 %v762_v1, %v1318_v5  ;;  %v661_v29 = vsub.f32 1.5, %v660_v26  ;;  %v595_v33 = vsub.f32 %v581_v28, %v588_v24  ;;  %vm675_vm2 = vmor %vm673_vm1, %vm674_vm0 }
  0xe9   :  { %v669_v32 = vmul.f32 %v1095_v37, %v668_v27 }
  0xea   :  { %v764_v31 = vsub.f32 %v1318_v5, %v1329_v2  ;;  %v662_v34 = vmul.f32 %v1091_v60, %v661_v29  ;;  %v602_v45 = vmax.f32 %v595_v33, 0.0 }
  0xeb   :  { %v1097_v35 = vpop.eup %1096  ;;  %v670_v43 = vmul.f32 0.5, %v669_v32 }
  0xec   :  { %v767_v14 = vmul.f32 0.5, %v1097_v35  ;;  %v666_v46 = vsel %vm665_vm15, %v1091_v60, %v662_v34  ;;  %v616_v53 = vadd.f32 1e-05, %v602_v45  ;;  %v609_v60 = vsub.f32 %v1261_v30, %v1320_v17 }
  0xed   :  { %v691_v50 = vmul.f32 %v666_v46, %v607_v36  ;;  %v671_v52 = vsub.f32 1.5, %v670_v43 }
  0xee   :  { %v768_v54 = vadd.f32 0.5, %v767_v14  ;;  %1098 = vrsqrt.f32 %v616_v53  ;;  %vm683_vm4 = vweird.f32 %v616_v53 }
  0xef   :  { %v714_v8 = vmul.f32 %v700_v40, %v691_v50  ;;  %v672_v48 = vmul.f32 %v1095_v37, %v671_v52 }
  0xf0   :  { %v769_v55 = vmul.f32 %v768_v54, %v758_v25 }
  0xf1   :  { %v737_v56 = vadd.f32 %v723_v49, %v714_v8  ;;  %v676_v39 = vsel %vm675_vm2, %v1095_v37, %v672_v48 }
  0xf2   :  { %v692_v38 = vmul.f32 %v676_v39, %v608_v4 }
  0xf3   :  { %v770_v3 = vmul.f32 0.5, %v737_v56 }
  0xf4   :  { %v715_v7 = vmul.f32 %v701_v13, %v692_v38  ;;  %v1099_v0 = vpop.eup %1098 }
  0xf5   :  { %1100 = vtanh.f32 %v770_v3  ;;  %v678_v9 = vmul.f32 %v1099_v0, %v616_v53  ;;  %vm684_vm3 = vweird.f32 %v1099_v0 }
  0xf6   :  { %v738_v44 = vadd.f32 %v724_v57, %v715_v7  ;;  %vm685_vm5 = vmor %vm683_vm4, %vm684_vm3 }
  0xf7   :  { %v679_v15 = vmul.f32 %v1099_v0, %v678_v9 }
  0xf8   :  { %v776_v12 = vmul.f32 0.5, %v738_v44 }
  0xf9   :  { %v680_v6 = vmul.f32 0.5, %v679_v15 }
  0xfa   :  { %1102 = vtanh.f32 %v776_v12 }
  0xfb   :  { %v1101_v5 = vpop.eup %1100  ;;  %v681_v22 = vsub.f32 1.5, %v680_v6 }
  0xfc   :  { %v772_v10 = vmul.f32 0.5, %v1101_v5 }
  0xfd   :  { %v682_v11 = vmul.f32 %v1099_v0, %v681_v22 }
  0xfe   :  { %v773_v41 = vadd.f32 0.5, %v772_v10 }
  0xff   :  { %v686_v42 = vsel %vm685_vm5, %v1099_v0, %v682_v11 }
 0x100   :  { %v1103_v18 = vpop.eup %1102  ;;  %v774_v58 = vmul.f32 %v773_v41, %v764_v31  ;;  %v693_v16 = vmul.f32 %v686_v42, %v609_v60 }
 0x101   :  { %v778_v19 = vmul.f32 0.5, %v1103_v18 }
 0x102   :  { %v775_v61 = vadd.f32 %v774_v58, %v769_v55  ;;  %v716_v23 = vmul.f32 %v702_v63, %v693_v16 }
 0x103   :  { %v779_v21 = vadd.f32 0.5, %v778_v19 }
 0x104   :  { %v739_v1 = vadd.f32 %v725_v20, %v716_v23 }
 0x105   :  { %v780_v24 = vmul.f32 %v779_v21, %v1323_v62 }
 0x106   :  { %v782_v59 = vmul.f32 0.5, %v739_v1 }
 0x107   :  { %v781_v25 = vadd.f32 %v780_v24, %v775_v61 }
 0x108   :  { %1104 = vtanh.f32 %v782_v59 }
 0x10e   :  { %v1105_v30 = vpop.eup %1104 }
 0x10f   :  { %v784_v17 = vmul.f32 0.5, %v1105_v30 }
 0x111   :  { %v785_v37 = vadd.f32 0.5, %v784_v17 }
 0x113   :  { %v786_v47 = vmul.f32 %v785_v37, %v1329_v2 }
 0x115   :  { %v787_v26 = vadd.f32 %v786_v47, %v781_v25 }
 0x117   :  { %788 = vst [vmem:[%s1354_s4] sm:$0xff] %v787_v26 }
 0x118   :  { %793 = vsyncpa [#allocation3], 1 }

</bundles_post_ra>
